<compile_context>
chip_gen: v5e
topology: v5e:2x2
jax: 0.10.0
libtpu: 0.0.40
codegen_flags: <defaults>
</compile_context>

<pallas_src>
import functools

import jax
import jax.numpy as jnp
from jax.experimental import pallas as pl
from jax.experimental.pallas import tpu as pltpu

HIDDEN = 128
OUT_PAD = 128  # fc3 output padded to a lane-dense 128 so stores are unmasked


def _dqn_kernel(x_ref, w1_ref, b1_ref, w2_ref, b2_ref, w3_ref, b3_ref, o_ref):
    # fc1 + relu (dropout = identity in eval mode)
    x = x_ref[...].astype(jnp.bfloat16)
    h1 = jnp.dot(x, w1_ref[...], preferred_element_type=jnp.float32) + b1_ref[...]
    h1 = jnp.maximum(h1, 0.0)

    # fc2 + relu (dropout = identity in eval mode)
    h2 = jnp.dot(h1.astype(jnp.bfloat16), w2_ref[...],
                 preferred_element_type=jnp.float32) + b2_ref[...]
    h2 = jnp.maximum(h2, 0.0)

    # fc3 (no activation); columns >= action_size have exactly-zero weights/bias
    out = jnp.dot(h2.astype(jnp.bfloat16), w3_ref[...],
                  preferred_element_type=jnp.float32) + b3_ref[...]
    o_ref[...] = out.astype(o_ref.dtype)


def prepare_params(raw):
    """One-time, out-of-the-hot-loop conversion of raw (f32, (in,out)-layout) params:
    bf16 weights for the MXU, fc3 zero-padded to 128 output lanes, biases as (1, F) f32.
    """
    A = raw["w3"].shape[1]
    w3p = jnp.zeros((HIDDEN, OUT_PAD), raw["w3"].dtype).at[:, :A].set(raw["w3"])
    b3p = jnp.zeros((OUT_PAD,), raw["b3"].dtype).at[:A].set(raw["b3"])
    return dict(
        w1=raw["w1"].astype(jnp.bfloat16),
        w2=raw["w2"].astype(jnp.bfloat16),
        w3=w3p.astype(jnp.bfloat16),
        b1=raw["b1"].reshape(1, -1).astype(jnp.float32),
        b2=raw["b2"].reshape(1, -1).astype(jnp.float32),
        b3=b3p.reshape(1, -1).astype(jnp.float32),
    )


@functools.partial(jax.jit, static_argnums=(2, 3))
def memory_dqn_forward(x, kp, action_size, block_b=512):
    """Forward pass of MemoryDQN (eval mode).

    x: (B, state_size) or (state_size,) float32
    kp: output of prepare_params(...)
    returns: (B, action_size) float32
    """
    if x.ndim == 1:
        x = x[None, :]  # unsqueeze(0), same as the PyTorch module
    B, S = x.shape

    # Only pad the batch when it isn't sublane-aligned; for typical replay
    # batches (multiples of 8) this is a no-op and avoids an extra HBM
    # round-trip of x.
    if B % 8 != 0:
        B_pad = ((B + 7) // 8) * 8
        x = jnp.zeros((B_pad, S), x.dtype).at[:B].set(x)
    else:
        B_pad = B

    # Batch tile: biggest that is still VMEM-cheap (per step ~TB*(S+3*128)*4 B),
    # capped by the (padded) batch. Always a multiple of 8.
    tb = min(block_b, B_pad)
    nb = pl.cdiv(B_pad, tb)

    flops = 2 * B_pad * (S * HIDDEN + HIDDEN * HIDDEN + HIDDEN * OUT_PAD)
    bytes_accessed = (
        int(x.size) * x.dtype.itemsize
        + B_pad * OUT_PAD * 4
        + sum(int(kp[k].size) * kp[k].dtype.itemsize
              for k in ("w1", "w2", "w3", "b1", "b2", "b3"))
    )

    out_p = pl.pallas_call(
        _dqn_kernel,
        out_shape=jax.ShapeDtypeStruct((B_pad, OUT_PAD), jnp.float32),
        grid=(nb,),
        in_specs=[
            pl.BlockSpec((tb, S), lambda i: (i, 0)),            # x: tiled over batch
            pl.BlockSpec((S, HIDDEN), lambda i: (0, 0)),        # w1: VMEM-resident
            pl.BlockSpec((1, HIDDEN), lambda i: (0, 0)),        # b1
            pl.BlockSpec((HIDDEN, HIDDEN), lambda i: (0, 0)),   # w2
            pl.BlockSpec((1, HIDDEN), lambda i: (0, 0)),        # b2
            pl.BlockSpec((HIDDEN, OUT_PAD), lambda i: (0, 0)),  # w3 (lane-padded)
            pl.BlockSpec((1, OUT_PAD), lambda i: (0, 0)),       # b3 (lane-padded)
        ],
        out_specs=pl.BlockSpec((tb, OUT_PAD), lambda i: (i, 0)),
        compiler_params=pltpu.CompilerParams(
            dimension_semantics=("parallel",),
        ),
        cost_estimate=pl.CostEstimate(
            flops=flops, transcendentals=0, bytes_accessed=bytes_accessed),
    )(x, kp["w1"], kp["b1"], kp["w2"], kp["b2"], kp["w3"], kp["b3"])

    return out_p[:B, :action_size]


def init_params(key, state_size, action_size):
    """Deterministic parameter init matching nn.Linear shapes (stored as (in, out))."""
    ks = jax.random.split(key, 6)

    def linear(kw, kb, fan_in, fan_out):
        bound = 1.0 / jnp.sqrt(fan_in)
        w = jax.random.uniform(kw, (fan_in, fan_out), jnp.float32, -bound, bound)
        b = jax.random.uniform(kb, (fan_out,), jnp.float32, -bound, bound)
        return w, b

    w1, b1 = linear(ks[0], ks[1], state_size, HIDDEN)
    w2, b2 = linear(ks[2], ks[3], HIDDEN, HIDDEN)
    w3, b3 = linear(ks[4], ks[5], HIDDEN, action_size)
    return dict(w1=w1, b1=b1, w2=w2, b2=b2, w3=w3, b3=b3)


def _reference(x, kp, action_size):
    """Pure-JAX reference mirroring the kernel's numerics (bf16 operands, f32 acc)."""
    if x.ndim == 1:
        x = x[None, :]
    h = jnp.dot(x.astype(jnp.bfloat16), kp["w1"],
                preferred_element_type=jnp.float32) + kp["b1"]
    h = jnp.maximum(h, 0.0)
    h = jnp.dot(h.astype(jnp.bfloat16), kp["w2"],
                preferred_element_type=jnp.float32) + kp["b2"]
    h = jnp.maximum(h, 0.0)
    out = jnp.dot(h.astype(jnp.bfloat16), kp["w3"],
                  preferred_element_type=jnp.float32) + kp["b3"]
    return out[:, :action_size]


if __name__ == "__main__":
    key = jax.random.PRNGKey(0)
    k_param, k_x = jax.random.split(key)

    state_size = 32
    action_size = 8
    batch = 2

    raw_params = init_params(k_param, state_size, action_size)
    kernel_params = prepare_params(raw_params)  # hoisted one-time conversion
    x = jax.random.normal(k_x, (batch, state_size), jnp.float32)

    out = memory_dqn_forward(x, kernel_params, action_size)
    out = jax.block_until_ready(out)

    ref = _reference(x, kernel_params, action_size)
    assert out.shape == (batch, action_size), out.shape
    assert jnp.allclose(out, ref, atol=1e-2, rtol=1e-2), "mismatch vs reference"

    # Also exercise the 1-D input path (unsqueeze(0) semantics) once.
    out1 = jax.block_until_ready(
        memory_dqn_forward(x[0], kernel_params, action_size))
    assert out1.shape == (1, action_size), out1.shape
    assert jnp.allclose(out1, ref[:1], atol=1e-2, rtol=1e-2), "1-D path mismatch"

    print("KERNEL_OK")
</pallas_src>

<mosaic_0001>
module attributes {stable_mosaic.version = 11 : i64} {
  func.func @_dqn_kernel(%arg0: i32, %arg1: memref<8x32xf32, #tpu.memory_space<vmem>>, %arg2: memref<32x128xbf16, #tpu.memory_space<vmem>>, %arg3: memref<1x128xf32, #tpu.memory_space<vmem>>, %arg4: memref<128x128xbf16, #tpu.memory_space<vmem>>, %arg5: memref<1x128xf32, #tpu.memory_space<vmem>>, %arg6: memref<128x128xbf16, #tpu.memory_space<vmem>>, %arg7: memref<1x128xf32, #tpu.memory_space<vmem>>, %arg8: memref<8x128xf32, #tpu.memory_space<vmem>>) attributes {dimension_semantics = [#tpu.dimension_semantics<parallel>], iteration_bounds = array<i64: 1>, scalar_prefetch = 0 : i64, scratch_operands = 0 : i64, tpu.core_type = #tpu.core_type<tc>, window_params = [{transform_indices = @transform_0, window_bounds = array<i64: 8, 32>}, {pipeline_mode = #tpu.pipeline_mode<synchronous>, transform_indices = @transform_1, window_bounds = array<i64: 32, 128>}, {pipeline_mode = #tpu.pipeline_mode<synchronous>, transform_indices = @transform_2, window_bounds = array<i64: 1, 128>}, {pipeline_mode = #tpu.pipeline_mode<synchronous>, transform_indices = @transform_3, window_bounds = array<i64: 128, 128>}, {pipeline_mode = #tpu.pipeline_mode<synchronous>, transform_indices = @transform_4, window_bounds = array<i64: 1, 128>}, {pipeline_mode = #tpu.pipeline_mode<synchronous>, transform_indices = @transform_5, window_bounds = array<i64: 128, 128>}, {pipeline_mode = #tpu.pipeline_mode<synchronous>, transform_indices = @transform_6, window_bounds = array<i64: 1, 128>}, {transform_indices = @transform_7, window_bounds = array<i64: 8, 128>}]} {
    %c0 = arith.constant 0 : index
    %c0_0 = arith.constant 0 : index
    %0 = vector.load %arg1[%c0, %c0_0] : memref<8x32xf32, #tpu.memory_space<vmem>>, vector<8x32xf32>
    %1 = arith.truncf %0 : vector<8x32xf32> to vector<8x32xbf16>
    %c0_1 = arith.constant 0 : index
    %c0_2 = arith.constant 0 : index
    %2 = vector.load %arg2[%c0_1, %c0_2] : memref<32x128xbf16, #tpu.memory_space<vmem>>, vector<32x128xbf16>
    %cst = arith.constant dense<0.000000e+00> : vector<8x128xf32>
    %3 = tpu.matmul %1, %2, %cst {dimension_numbers = #tpu.dot_dimension_numbers<[1], [0], [0], [1], [0, 0, 1, 1], [], []>} : vector<8x32xbf16>, vector<32x128xbf16>, vector<8x128xf32> -> vector<8x128xf32>
    %c0_3 = arith.constant 0 : index
    %c0_4 = arith.constant 0 : index
    %4 = vector.load %arg3[%c0_3, %c0_4] : memref<1x128xf32, #tpu.memory_space<vmem>>, vector<1x128xf32>
    %5 = vector.broadcast %4 : vector<1x128xf32> to vector<8x128xf32>
    %6 = arith.addf %3, %5 : vector<8x128xf32>
    %cst_5 = arith.constant 0.000000e+00 : f32
    %7 = vector.broadcast %cst_5 : f32 to vector<8x128xf32>
    %8 = arith.maximumf %6, %7 : vector<8x128xf32>
    %9 = arith.truncf %8 : vector<8x128xf32> to vector<8x128xbf16>
    %c0_6 = arith.constant 0 : index
    %c0_7 = arith.constant 0 : index
    %10 = vector.load %arg4[%c0_6, %c0_7] : memref<128x128xbf16, #tpu.memory_space<vmem>>, vector<128x128xbf16>
    %cst_8 = arith.constant dense<0.000000e+00> : vector<8x128xf32>
    %11 = tpu.matmul %9, %10, %cst_8 {dimension_numbers = #tpu.dot_dimension_numbers<[1], [0], [0], [1], [0, 0, 1, 1], [], []>} : vector<8x128xbf16>, vector<128x128xbf16>, vector<8x128xf32> -> vector<8x128xf32>
    %c0_9 = arith.constant 0 : index
    %c0_10 = arith.constant 0 : index
    %12 = vector.load %arg5[%c0_9, %c0_10] : memref<1x128xf32, #tpu.memory_space<vmem>>, vector<1x128xf32>
    %13 = vector.broadcast %12 : vector<1x128xf32> to vector<8x128xf32>
    %14 = arith.addf %11, %13 : vector<8x128xf32>
    %cst_11 = arith.constant 0.000000e+00 : f32
    %15 = vector.broadcast %cst_11 : f32 to vector<8x128xf32>
    %16 = arith.maximumf %14, %15 : vector<8x128xf32>
    %17 = arith.truncf %16 : vector<8x128xf32> to vector<8x128xbf16>
    %c0_12 = arith.constant 0 : index
    %c0_13 = arith.constant 0 : index
    %18 = vector.load %arg6[%c0_12, %c0_13] : memref<128x128xbf16, #tpu.memory_space<vmem>>, vector<128x128xbf16>
    %cst_14 = arith.constant dense<0.000000e+00> : vector<8x128xf32>
    %19 = tpu.matmul %17, %18, %cst_14 {dimension_numbers = #tpu.dot_dimension_numbers<[1], [0], [0], [1], [0, 0, 1, 1], [], []>} : vector<8x128xbf16>, vector<128x128xbf16>, vector<8x128xf32> -> vector<8x128xf32>
    %c0_15 = arith.constant 0 : index
    %c0_16 = arith.constant 0 : index
    %20 = vector.load %arg7[%c0_15, %c0_16] : memref<1x128xf32, #tpu.memory_space<vmem>>, vector<1x128xf32>
    %21 = vector.broadcast %20 : vector<1x128xf32> to vector<8x128xf32>
    %22 = arith.addf %19, %21 : vector<8x128xf32>
    %c0_17 = arith.constant 0 : index
    %c0_18 = arith.constant 0 : index
    %23 = vector.load %arg8[%c0_17, %c0_18] : memref<8x128xf32, #tpu.memory_space<vmem>>, vector<8x128xf32>
    tpu.vector_store %arg8[%c0_17, %c0_18], %22 {strides = array<i32>} : memref<8x128xf32, #tpu.memory_space<vmem>>, vector<8x128xf32>,
    return
  }
  func.func @transform_0(%arg0: i32) -> (i32, i32) {
    %c0_i32 = arith.constant 0 : i32
    %c0_i32_0 = arith.constant 0 : i32
    return %arg0, %c0_i32 : i32, i32
  }
  func.func @transform_1(%arg0: i32) -> (i32, i32) {
    %c0_i32 = arith.constant 0 : i32
    %c0_i32_0 = arith.constant 0 : i32
    %c0_i32_1 = arith.constant 0 : i32
    return %c0_i32, %c0_i32_0 : i32, i32
  }
  func.func @transform_2(%arg0: i32) -> (i32, i32) {
    %c0_i32 = arith.constant 0 : i32
    %c0_i32_0 = arith.constant 0 : i32
    %c0_i32_1 = arith.constant 0 : i32
    return %c0_i32, %c0_i32_0 : i32, i32
  }
  func.func @transform_3(%arg0: i32) -> (i32, i32) {
    %c0_i32 = arith.constant 0 : i32
    %c0_i32_0 = arith.constant 0 : i32
    %c0_i32_1 = arith.constant 0 : i32
    return %c0_i32, %c0_i32_0 : i32, i32
  }
  func.func @transform_4(%arg0: i32) -> (i32, i32) {
    %c0_i32 = arith.constant 0 : i32
    %c0_i32_0 = arith.constant 0 : i32
    %c0_i32_1 = arith.constant 0 : i32
    return %c0_i32, %c0_i32_0 : i32, i32
  }
  func.func @transform_5(%arg0: i32) -> (i32, i32) {
    %c0_i32 = arith.constant 0 : i32
    %c0_i32_0 = arith.constant 0 : i32
    %c0_i32_1 = arith.constant 0 : i32
    return %c0_i32, %c0_i32_0 : i32, i32
  }
  func.func @transform_6(%arg0: i32) -> (i32, i32) {
    %c0_i32 = arith.constant 0 : i32
    %c0_i32_0 = arith.constant 0 : i32
    %c0_i32_1 = arith.constant 0 : i32
    return %c0_i32, %c0_i32_0 : i32, i32
  }
  func.func @transform_7(%arg0: i32) -> (i32, i32) {
    %c0_i32 = arith.constant 0 : i32
    %c0_i32_0 = arith.constant 0 : i32
    return %arg0, %c0_i32 : i32, i32
  }
}

</mosaic_0001>

<bundles_post_ra>
// kernel: memory_dqn_forward.1
= control target key start
LH: loop header
LB: loop body
LE: loop exit
PB: predicated region body
PF: predicated region fallthrough
CT: control target
= control target key end

     0   :  { %12 = vsyncpa [#allocation3], 0  ;;  %s530_s0 = inlined_call_operand.vmem [shape: f32[8,32], index: 0, kind: input, shape index: {}]   ;;  %s531_s1 = inlined_call_operand.hbm [shape: bf16[32,128], index: 1, kind: input, shape index: {}]   ;;  %s532_s2 = inlined_call_operand.vmem [shape: f32[1,128], index: 2, kind: input, shape index: {}]   ;;  %s533_s3 = inlined_call_operand.hbm [shape: bf16[128,128], index: 3, kind: input, shape index: {}]   ;;  %s534_s4 = inlined_call_operand.vmem [shape: f32[1,128], index: 4, kind: input, shape index: {}]   ;;  %s535_s5 = inlined_call_operand.hbm [shape: bf16[128,128], index: 5, kind: input, shape index: {}]   ;;  %s536_s6 = inlined_call_operand.vmem [shape: f32[1,128], index: 6, kind: input, shape index: {}]   ;;  %s537_s7 = inlined_call_operand.vmem [shape: f32[8,128], index: 7, kind: output, shape index: {}]  }
   0x1   :  { %13 = vsyncpa [#allocation5], 0  ;;  %s35_s26 = sshll.u32 %s533_s3, 4  ;;  %s461_s27 = smov [#allocation4]   ;;  %s36_s26 = int_to_ptr.hbm [resolvable:$true] %s35_s26 }
   0x2   :  { %s37_s28 = sshll.u32 %s461_s27, 4  ;;  %s20_s8 = sshll.u32 %s531_s1, 4  ;;  %s38_s28 = int_to_ptr.vmem [resolvable:$true] %s37_s28  ;;  %s21_s8 = int_to_ptr.hbm [resolvable:$true] %s20_s8 }
   0x3   :  { %s462_s9 = smov 64   ;;  %s463_s10 = smov 4  }
   0x4   :  { %43 = dma.hbm_to_vmem [thread:$0]  %s36_s26, 1024, %s38_s28, [#allocation5], %s462_s9, %s462_s9, %s463_s10  }
   0x5   :  { %s464_s11 = smov [#allocation2]   ;;  %s50_s15 = sshll.u32 %s535_s5, 4  ;;  %s51_s15 = int_to_ptr.hbm [resolvable:$true] %s50_s15 }
   0x6   :  { %s22_s12 = sshll.u32 %s464_s11, 4  ;;  %s465_s3 = smov [#allocation6]   ;;  %s23_s12 = int_to_ptr.vmem [resolvable:$true] %s22_s12 }
   0x7   :  { %28 = dma.hbm_to_vmem [thread:$0]  %s21_s8, 256, %s23_s12, [#allocation3], %s462_s9, %s462_s9, %s463_s10  }
   0x8   :  { %s52_s16 = sshll.u32 %s465_s3, 4  ;;  %s53_s16 = int_to_ptr.vmem [resolvable:$true] %s52_s16 }
   0x9   :  { %58 = dma.hbm_to_vmem [thread:$0]  %s51_s15, 1024, %s53_s16, [#allocation5], %s462_s9, %s462_s9, %s463_s10  }
   0xa   :  { %457 = dma.done.wait [#allocation3], 256  }
   0xb   :  { %458 = vsyncadd [#allocation3], 4294967040 }
   0xc   :  { %459 = dma.done.wait [#allocation5], 2048  }
   0xd   :  { %460 = vsyncadd [#allocation5], 4294965248  ;;  %v360_v0 = vld [vmem:[#allocation2 + $0x8] sm:$0xff]  ;;  %v359_v2 = vld [vmem:[#allocation2] sm:$0xff]  ;;  %vm96_vm0 = vcmask 261120  }
   0xe   :  { %v368_v1 = vld [vmem:[#allocation4 + $0x38] sm:$0xff]  ;;  %106 = vmatpush.bf16.msra.mxu0 %v360_v0  ;;  %v74_v3 = vld [vmem:[%s530_s0] sm:$0xff]  ;;  %v366_v6 = vld [vmem:[#allocation4 + $0x28] sm:$0xff] }
   0xf   :  { %183 = vmatpush.bf16.msra.mxu1 %v368_v1  ;;  %v367_v4 = vld [vmem:[#allocation4 + $0x30] sm:$0xff]  ;;  %v75_v5 = vpack.c.bf16 %v74_v3, %v74_v3  ;;  %v365_v7 = vld [vmem:[#allocation4 + $0x20] sm:$0xff]  ;;  %v364_v8 = vld [vmem:[#allocation4 + $0x18] sm:$0xff] }
  0x10   :  { %v363_v9 = vld [vmem:[#allocation4 + $0x10] sm:$0xff]  ;;  %v362_v10 = vld [vmem:[#allocation4 + $0x8] sm:$0xff]  ;;  %v361_v11 = vld [vmem:[#allocation4] sm:$0xff] }
  0x11   :  { %v376_v12 = vld [vmem:[#allocation6 + $0x38] sm:$0xff]  ;;  %v375_v13 = vld [vmem:[#allocation6 + $0x30] sm:$0xff]  ;;  %v374_v14 = vld [vmem:[#allocation6 + $0x28] sm:$0xff] }
  0x12   :  { %107 = vmatpush.bf16.msra.mxu0 %v359_v2  ;;  %266 = vmatpush.bf16.msra.mxu2 %v376_v12  ;;  %v373_v15 = vld [vmem:[#allocation6 + $0x20] sm:$0xff]  ;;  %v372_v16 = vld [vmem:[#allocation6 + $0x18] sm:$0xff]  ;;  %v371_v17 = vld [vmem:[#allocation6 + $0x10] sm:$0xff] }
  0x13   :  { %184 = vmatpush.bf16.msra.mxu1 %v367_v4  ;;  %v382_v18 = vld [vmem:[%s532_s2] ss:$0 sm:$0xff]  ;;  %v370_v24 = vld [vmem:[#allocation6 + $0x8] sm:$0xff]  ;;  %v369_v25 = vld [vmem:[#allocation6] sm:$0xff] }
  0x14   :  { %v383_v26 = vld [vmem:[%s534_s4] ss:$0 sm:$0xff] }
  0x15   :  { %294 = vmatmul.msk.bf16.vlgmr.msra.gmra.mxu0 %vm96_vm0, %v75_v5  ;;  %v384_v32 = vld [vmem:[%s536_s6] ss:$0 sm:$0xff] }
  0x16   :  { %267 = vmatpush.bf16.msra.mxu2 %v375_v13 }
  0x17   :  { %185 = vmatpush.bf16.msra.mxu1 %v366_v6 }
  0x1a   :  { %268 = vmatpush.bf16.msra.mxu2 %v374_v14 }
  0x1b   :  { %186 = vmatpush.bf16.msra.mxu1 %v365_v7 }
  0x1e   :  { %269 = vmatpush.bf16.msra.mxu2 %v373_v15 }
  0x1f   :  { %187 = vmatpush.bf16.msra.mxu1 %v364_v8 }
  0x22   :  { %270 = vmatpush.bf16.msra.mxu2 %v372_v16 }
  0x23   :  { %188 = vmatpush.bf16.msra.mxu1 %v363_v9 }
  0x26   :  { %271 = vmatpush.bf16.msra.mxu2 %v371_v17 }
  0x27   :  { %189 = vmatpush.bf16.msra.mxu1 %v362_v10 }
  0x2a   :  { %272 = vmatpush.bf16.msra.mxu2 %v370_v24 }
  0x2b   :  { %190 = vmatpush.bf16.msra.mxu1 %v361_v11 }
  0x2e   :  { %273 = vmatpush.bf16.msra.mxu2 %v369_v25 }
  0x92   :  { %v109_v19 = vpop.f32.mrf.mxu0 }
  0x93   :  { %v110_v20 = vadd.f32 %v382_v18, %v109_v19 }
  0x95   :  { %v113_v21 = vmax.f32 %v110_v20, 0.0 }
  0x97   :  { %v114_v22 = vpack.c.bf16 %v113_v21, %v113_v21 }
  0x99   :  { %191 = vmatmul.bf16.vlgmr.msra.gmra.mxu1 %v114_v22 }
  0x9a   :  { %v111_v23 = vpop.f32.mrf.mxu0 }
 0x116   :  { %v192_v27 = vpop.f32.mrf.mxu1 }
 0x117   :  { %v193_v28 = vadd.f32 %v383_v26, %v192_v27 }
 0x119   :  { %v196_v29 = vmax.f32 %v193_v28, 0.0 }
 0x11b   :  { %v197_v30 = vpack.c.bf16 %v196_v29, %v196_v29 }
 0x11d   :  { %274 = vmatmul.bf16.vlgmr.msra.gmra.mxu2 %v197_v30 }
 0x11e   :  { %v194_v31 = vpop.f32.mrf.mxu1 }
 0x1a0   :  { %v275_v33 = vpop.f32.mrf.mxu2 }
 0x1a1   :  { %v276_v34 = vadd.f32 %v384_v32, %v275_v33 }
 0x1a3   :  { %279 = vst [vmem:[%s537_s7] sm:$0xff] %v276_v34 }
 0x1a8   :  { %v277_v35 = vpop.f32.mrf.mxu2 }
 0x1a9   :  { %284 = vsyncpa [#allocation3], 1 }
 0x1aa   :  { %285 = vsyncpa [#allocation5], 1 }

</bundles_post_ra>
